<compile_context>
chip_gen: v7x
topology: tpu7x:2x2x1
jax: 0.10.0
libtpu: 0.0.40
codegen_flags: <defaults>
</compile_context>

<pallas_src>
import jax
import jax.numpy as jnp
from jax.experimental import pallas as pl
from jax.experimental.pallas import tpu as pltpu


# Logical (torch) dims and padded (lane-aligned) dims.
D_IN = 28 * 28          # 784
H1, H1P = 312, 384      # 384 = 3 * 128
H2 = 256
D_OUT, D_OUTP = 10, 128

_MIN_TILE = 256         # keep batch tiles >= 256 rows so grid-step overhead amortizes


def _round_up(n, m):
    return ((n + m - 1) // m) * m


def mlp_kernel(x_ref, w1_ref, b1_ref, w2_ref, b2_ref, w3_ref, b3_ref, o_ref):
    # x tile: (TB, 784) f32 -> cast to bf16 in-register (no extra HBM copy).
    x = x_ref[...].astype(jnp.bfloat16)

    # fc1 + ReLU (bias/ReLU in the f32 accumulator). Dropout = identity (eval).
    h1 = jnp.dot(x, w1_ref[...], preferred_element_type=jnp.float32) + b1_ref[...]
    h1 = jnp.maximum(h1, 0.0)

    # fc2 + ReLU. Dropout = identity (eval).
    h2 = jnp.dot(h1.astype(jnp.bfloat16), w2_ref[...],
                 preferred_element_type=jnp.float32) + b2_ref[...]
    h2 = jnp.maximum(h2, 0.0)

    # fc3 (logits), lane-dense 128-wide unmasked store.
    o_ref[...] = jnp.dot(h2.astype(jnp.bfloat16), w3_ref[...],
                         preferred_element_type=jnp.float32) + b3_ref[...]


def pack_params(params):
    """Pad to lane-aligned shapes and cast weights to bf16 (biases stay f32)."""
    w1, b1, w2, b2, w3, b3 = params
    w1p = jnp.pad(w1, ((0, 0), (0, H1P - H1))).astype(jnp.bfloat16)        # (784, 384)
    b1p = jnp.pad(b1, ((0, 0), (0, H1P - H1)))                             # (1, 384) f32
    w2p = jnp.pad(w2, ((0, H1P - H1), (0, 0))).astype(jnp.bfloat16)        # (384, 256)
    b2p = b2                                                               # (1, 256) f32
    w3p = jnp.pad(w3, ((0, 0), (0, D_OUTP - D_OUT))).astype(jnp.bfloat16)  # (256, 128)
    b3p = jnp.pad(b3, ((0, 0), (0, D_OUTP - D_OUT)))                       # (1, 128) f32
    # Padded h1 columns are exactly 0 (w1/b1 pads are 0) and hit zero rows of
    # w2p, so padded shapes are numerically identical to the logical model.
    return (w1p, b1p, w2p, b2p, w3p, b3p)


def neural_network_forward(x_nchw, params, *, tb=1024):
    """Forward pass matching NeuralNetwork.forward (eval mode).

    x_nchw: (B, 1, 28, 28) float32  ->  (B, 10) float32 logits.
    """
    w1p, b1p, w2p, b2p, w3p, b3p = pack_params(params)

    B = x_nchw.shape[0]
    x = x_nchw.reshape(B, D_IN)            # x.view(-1, 784); stays f32 (no HBM copy)

    # Batch tile selection:
    #   * B >= 512: >= 2 tiles (both v7x TCs get work), tiles multiple of 16
    #     (clean bf16 packing after the in-kernel cast), capped at `tb`.
    #   * otherwise: one block equal to the full batch dim (always a legal
    #     block shape, no padding / no masked edge tile needed).
    if B >= 2 * _MIN_TILE:
        TB = min(tb, _round_up(pl.cdiv(B, 2), 16))
    else:
        TB = B
    grid = (pl.cdiv(B, TB),)               # last tile may be partial: stores masked

    def tiled(shape):                      # x / out: tiled along the batch grid axis
        return pl.BlockSpec(shape, lambda i: (i, 0))

    def resident(shape):                   # weights / biases: constant block index
        return pl.BlockSpec(shape, lambda i: (0, 0))

    flops = 2 * B * (D_IN * H1P + H1P * H2 + H2 * D_OUTP)
    bytes_accessed = (
        x.size * 4                                          # f32 activations in
        + (w1p.size + w2p.size + w3p.size) * 2              # bf16 weights
        + (b1p.size + b2p.size + b3p.size) * 4              # f32 biases
        + B * D_OUTP * 4                                    # f32 logits out
    )

    out = pl.pallas_call(
        mlp_kernel,
        out_shape=jax.ShapeDtypeStruct((B, D_OUTP), jnp.float32),
        grid=grid,
        in_specs=[
            tiled((TB, D_IN)),
            resident((D_IN, H1P)), resident((1, H1P)),
            resident((H1P, H2)),   resident((1, H2)),
            resident((H2, D_OUTP)), resident((1, D_OUTP)),
        ],
        out_specs=tiled((TB, D_OUTP)),
        compiler_params=pltpu.CompilerParams(
            dimension_semantics=("parallel",),
            vmem_limit_bytes=32 << 20,     # explicit: v5e default scoped VMEM is 16 MiB
        ),
        cost_estimate=pl.CostEstimate(
            flops=flops, transcendentals=0, bytes_accessed=bytes_accessed),
    )(x, w1p, b1p, w2p, b2p, w3p, b3p)

    return out[:, :D_OUT]


def init_params(key):
    """Parameter init matching nn.Linear shapes (stored transposed: (in, out))."""
    k1, k2, k3, k4, k5, k6 = jax.random.split(key, 6)

    def linear(kw, kb, fan_in, fan_out):
        bound = 1.0 / jnp.sqrt(fan_in)
        w = jax.random.uniform(kw, (fan_in, fan_out), jnp.float32, -bound, bound)
        b = jax.random.uniform(kb, (1, fan_out), jnp.float32, -bound, bound)
        return w, b

    w1, b1 = linear(k1, k2, D_IN, H1)
    w2, b2 = linear(k3, k4, H1, H2)
    w3, b3 = linear(k5, k6, H2, D_OUT)
    return (w1, b1, w2, b2, w3, b3)


def reference_forward(x_nchw, params):
    """Pure-JAX reference with the same bf16 quantization as the kernel."""
    w1, b1, w2, b2, w3, b3 = params
    x = x_nchw.reshape(x_nchw.shape[0], D_IN).astype(jnp.bfloat16)
    w1b, w2b, w3b = (w.astype(jnp.bfloat16) for w in (w1, w2, w3))
    h1 = jnp.maximum(jnp.dot(x, w1b, preferred_element_type=jnp.float32) + b1, 0.0)
    h2 = jnp.maximum(
        jnp.dot(h1.astype(jnp.bfloat16), w2b, preferred_element_type=jnp.float32) + b2,
        0.0)
    return jnp.dot(h2.astype(jnp.bfloat16), w3b,
                   preferred_element_type=jnp.float32) + b3


if __name__ == "__main__":
    key = jax.random.PRNGKey(0)
    k_params, k_x = jax.random.split(key)

    params = init_params(k_params)
    # Small MNIST-like batch: (B=32, C=1, H=28, W=28), NCHW like torch.
    x = jax.random.normal(k_x, (32, 1, 28, 28), dtype=jnp.float32)

    out = jax.block_until_ready(neural_network_forward(x, params))

    ref = reference_forward(x, params)
    assert out.shape == (32, 10)
    assert jnp.allclose(out, ref, atol=1e-2, rtol=1e-2), "mismatch vs reference"

    print("KERNEL_OK")
</pallas_src>

<mosaic_0001>
module attributes {stable_mosaic.version = 11 : i64} {
  func.func @mlp_kernel(%arg0: i32, %arg1: memref<32x784xf32, #tpu.memory_space<vmem>>, %arg2: memref<784x384xbf16, #tpu.memory_space<vmem>>, %arg3: memref<1x384xf32, #tpu.memory_space<vmem>>, %arg4: memref<384x256xbf16, #tpu.memory_space<vmem>>, %arg5: memref<1x256xf32, #tpu.memory_space<vmem>>, %arg6: memref<256x128xbf16, #tpu.memory_space<vmem>>, %arg7: memref<1x128xf32, #tpu.memory_space<vmem>>, %arg8: memref<32x128xf32, #tpu.memory_space<vmem>>) attributes {dimension_semantics = [#tpu.dimension_semantics<parallel>], iteration_bounds = array<i64: 1>, scalar_prefetch = 0 : i64, scratch_operands = 0 : i64, tpu.core_type = #tpu.core_type<tc>, window_params = [{transform_indices = @transform_0, window_bounds = array<i64: 32, 784>}, {pipeline_mode = #tpu.pipeline_mode<synchronous>, transform_indices = @transform_1, window_bounds = array<i64: 784, 384>}, {pipeline_mode = #tpu.pipeline_mode<synchronous>, transform_indices = @transform_2, window_bounds = array<i64: 1, 384>}, {pipeline_mode = #tpu.pipeline_mode<synchronous>, transform_indices = @transform_3, window_bounds = array<i64: 384, 256>}, {pipeline_mode = #tpu.pipeline_mode<synchronous>, transform_indices = @transform_4, window_bounds = array<i64: 1, 256>}, {pipeline_mode = #tpu.pipeline_mode<synchronous>, transform_indices = @transform_5, window_bounds = array<i64: 256, 128>}, {pipeline_mode = #tpu.pipeline_mode<synchronous>, transform_indices = @transform_6, window_bounds = array<i64: 1, 128>}, {transform_indices = @transform_7, window_bounds = array<i64: 32, 128>}]} {
    %c0 = arith.constant 0 : index
    %c0_0 = arith.constant 0 : index
    %0 = vector.load %arg1[%c0, %c0_0] : memref<32x784xf32, #tpu.memory_space<vmem>>, vector<32x784xf32>
    %1 = arith.truncf %0 : vector<32x784xf32> to vector<32x784xbf16>
    %c0_1 = arith.constant 0 : index
    %c0_2 = arith.constant 0 : index
    %2 = vector.load %arg2[%c0_1, %c0_2] : memref<784x384xbf16, #tpu.memory_space<vmem>>, vector<784x384xbf16>
    %cst = arith.constant dense<0.000000e+00> : vector<32x384xf32>
    %3 = tpu.matmul %1, %2, %cst {dimension_numbers = #tpu.dot_dimension_numbers<[1], [0], [0], [1], [0, 0, 1, 1], [], []>} : vector<32x784xbf16>, vector<784x384xbf16>, vector<32x384xf32> -> vector<32x384xf32>
    %c0_3 = arith.constant 0 : index
    %c0_4 = arith.constant 0 : index
    %4 = vector.load %arg3[%c0_3, %c0_4] : memref<1x384xf32, #tpu.memory_space<vmem>>, vector<1x384xf32>
    %5 = vector.broadcast %4 : vector<1x384xf32> to vector<32x384xf32>
    %6 = arith.addf %3, %5 : vector<32x384xf32>
    %cst_5 = arith.constant 0.000000e+00 : f32
    %7 = vector.broadcast %cst_5 : f32 to vector<32x384xf32>
    %8 = arith.maximumf %6, %7 : vector<32x384xf32>
    %9 = arith.truncf %8 : vector<32x384xf32> to vector<32x384xbf16>
    %c0_6 = arith.constant 0 : index
    %c0_7 = arith.constant 0 : index
    %10 = vector.load %arg4[%c0_6, %c0_7] : memref<384x256xbf16, #tpu.memory_space<vmem>>, vector<384x256xbf16>
    %cst_8 = arith.constant dense<0.000000e+00> : vector<32x256xf32>
    %11 = tpu.matmul %9, %10, %cst_8 {dimension_numbers = #tpu.dot_dimension_numbers<[1], [0], [0], [1], [0, 0, 1, 1], [], []>} : vector<32x384xbf16>, vector<384x256xbf16>, vector<32x256xf32> -> vector<32x256xf32>
    %c0_9 = arith.constant 0 : index
    %c0_10 = arith.constant 0 : index
    %12 = vector.load %arg5[%c0_9, %c0_10] : memref<1x256xf32, #tpu.memory_space<vmem>>, vector<1x256xf32>
    %13 = vector.broadcast %12 : vector<1x256xf32> to vector<32x256xf32>
    %14 = arith.addf %11, %13 : vector<32x256xf32>
    %cst_11 = arith.constant 0.000000e+00 : f32
    %15 = vector.broadcast %cst_11 : f32 to vector<32x256xf32>
    %16 = arith.maximumf %14, %15 : vector<32x256xf32>
    %17 = arith.truncf %16 : vector<32x256xf32> to vector<32x256xbf16>
    %c0_12 = arith.constant 0 : index
    %c0_13 = arith.constant 0 : index
    %18 = vector.load %arg6[%c0_12, %c0_13] : memref<256x128xbf16, #tpu.memory_space<vmem>>, vector<256x128xbf16>
    %cst_14 = arith.constant dense<0.000000e+00> : vector<32x128xf32>
    %19 = tpu.matmul %17, %18, %cst_14 {dimension_numbers = #tpu.dot_dimension_numbers<[1], [0], [0], [1], [0, 0, 1, 1], [], []>} : vector<32x256xbf16>, vector<256x128xbf16>, vector<32x128xf32> -> vector<32x128xf32>
    %c0_15 = arith.constant 0 : index
    %c0_16 = arith.constant 0 : index
    %20 = vector.load %arg7[%c0_15, %c0_16] : memref<1x128xf32, #tpu.memory_space<vmem>>, vector<1x128xf32>
    %21 = vector.broadcast %20 : vector<1x128xf32> to vector<32x128xf32>
    %22 = arith.addf %19, %21 : vector<32x128xf32>
    %c0_17 = arith.constant 0 : index
    %c0_18 = arith.constant 0 : index
    %23 = vector.load %arg8[%c0_17, %c0_18] : memref<32x128xf32, #tpu.memory_space<vmem>>, vector<32x128xf32>
    tpu.vector_store %arg8[%c0_17, %c0_18], %22 {strides = array<i32>} : memref<32x128xf32, #tpu.memory_space<vmem>>, vector<32x128xf32>,
    return
  }
  func.func @transform_0(%arg0: i32) -> (i32, i32) {
    %c0_i32 = arith.constant 0 : i32
    %c0_i32_0 = arith.constant 0 : i32
    return %arg0, %c0_i32 : i32, i32
  }
  func.func @transform_1(%arg0: i32) -> (i32, i32) {
    %c0_i32 = arith.constant 0 : i32
    %c0_i32_0 = arith.constant 0 : i32
    %c0_i32_1 = arith.constant 0 : i32
    return %c0_i32, %c0_i32_0 : i32, i32
  }
  func.func @transform_2(%arg0: i32) -> (i32, i32) {
    %c0_i32 = arith.constant 0 : i32
    %c0_i32_0 = arith.constant 0 : i32
    %c0_i32_1 = arith.constant 0 : i32
    return %c0_i32, %c0_i32_0 : i32, i32
  }
  func.func @transform_3(%arg0: i32) -> (i32, i32) {
    %c0_i32 = arith.constant 0 : i32
    %c0_i32_0 = arith.constant 0 : i32
    %c0_i32_1 = arith.constant 0 : i32
    return %c0_i32, %c0_i32_0 : i32, i32
  }
  func.func @transform_4(%arg0: i32) -> (i32, i32) {
    %c0_i32 = arith.constant 0 : i32
    %c0_i32_0 = arith.constant 0 : i32
    %c0_i32_1 = arith.constant 0 : i32
    return %c0_i32, %c0_i32_0 : i32, i32
  }
  func.func @transform_5(%arg0: i32) -> (i32, i32) {
    %c0_i32 = arith.constant 0 : i32
    %c0_i32_0 = arith.constant 0 : i32
    %c0_i32_1 = arith.constant 0 : i32
    return %c0_i32, %c0_i32_0 : i32, i32
  }
  func.func @transform_6(%arg0: i32) -> (i32, i32) {
    %c0_i32 = arith.constant 0 : i32
    %c0_i32_0 = arith.constant 0 : i32
    %c0_i32_1 = arith.constant 0 : i32
    return %c0_i32, %c0_i32_0 : i32, i32
  }
  func.func @transform_7(%arg0: i32) -> (i32, i32) {
    %c0_i32 = arith.constant 0 : i32
    %c0_i32_0 = arith.constant 0 : i32
    return %arg0, %c0_i32 : i32, i32
  }
}

</mosaic_0001>

<bundles_post_ra>
// kernel: tpu_custom_call.1
= control target key start
LH: loop header
LB: loop body
LE: loop exit
PB: predicated region body
PF: predicated region fallthrough
CT: control target
= control target key end

     0   :  { %12 = vsyncpa [#allocation3], 0  ;;  %s3202_s0 = inlined_call_operand.hbm [shape: f32[32,784], index: 0, kind: input, shape index: {}]   ;;  %s3203_s1 = inlined_call_operand.hbm [shape: bf16[784,384], index: 1, kind: input, shape index: {}]   ;;  %s3204_s2 = inlined_call_operand.vmem [shape: f32[1,384], index: 2, kind: input, shape index: {}]   ;;  %s3205_s3 = inlined_call_operand.hbm [shape: bf16[384,256], index: 3, kind: input, shape index: {}]   ;;  %s3206_s4 = inlined_call_operand.vmem [shape: f32[1,256], index: 4, kind: input, shape index: {}]   ;;  %s3207_s5 = inlined_call_operand.hbm [shape: bf16[256,128], index: 5, kind: input, shape index: {}]   ;;  %s3208_s6 = inlined_call_operand.vmem [shape: f32[1,128], index: 6, kind: input, shape index: {}]   ;;  %s3209_s7 = inlined_call_operand.hbm [shape: f32[32,128], index: 7, kind: output, shape index: {}]  }
   0x1   :  { %13 = vsyncpa [#allocation6], 0 }
   0x2   :  { %14 = vsyncpa [#allocation9], 0 }
   0x3   :  { %15 = vsyncpa [#allocation4], 0  ;;  %s2981_s24 = smov [#allocation5]   ;;  %s2863_s28 = scalar_lea.hbm %s3203_s1, 18816 }
   0x4   :  { %s33_s25 = sshll.u32 %s2981_s24, 4  ;;  %p2864_p0 = scmp.ne.s32.totalorder %s3203_s1, %s2863_s28  ;;  %s34_s25 = int_to_ptr.vmem [resolvable:$true] %s33_s25 }
   0x5   :  { %p2867_p1 = scmp.lt.u32.totalorder %s2863_s28, %s3203_s1 }
   0x7   :  { %p2869_p2 = pnand %p2867_p1, %p2864_p0 }
   0x9   :  { %2872 = shalt.err (!%p2869_p2)
}
   0xa   :  { %s2873_s10 = scalar_lea.vmem %s34_s25, 18816  ;;  %p2878_p4 = scmp.lt.s32.totalorder %s34_s25, %s34_s25 }
   0xb   :  { %p2874_p3 = scmp.ne.s32.totalorder %s34_s25, %s2873_s10  ;;  %p2879_p5 = scmp.lt.s32.totalorder %s2873_s10, %s2873_s10 }
   0xd   :  { %p2880_p6 = por %p2879_p5, %p2878_p4 }
   0xf   :  { %p2881_p7 = pnand %p2880_p6, %p2874_p3 }
  0x11   :  { %2884 = shalt.err (!%p2881_p7)
}
  0x12   :  { %s2982_s11 = smov 192   ;;  %s2983_s12 = smov 12  }
  0x13   :  { %39 = dma.hbm_to_vmem [thread:$0]  %s3203_s1, 18816, %s34_s25, [#allocation6], %s2982_s11, %s2982_s11, %s2983_s12  }
  0x14   :  { %s2984_s15 = smov [#allocation2]   ;;  %s2885_s19 = scalar_lea.hbm %s3202_s0, 3584 }
  0x15   :  { %s21_s16 = sshll.u32 %s2984_s15, 4  ;;  %p2886_p8 = scmp.ne.s32.totalorder %s3202_s0, %s2885_s19  ;;  %s22_s16 = int_to_ptr.vmem [resolvable:$true] %s21_s16 }
  0x16   :  { %p2889_p9 = scmp.lt.u32.totalorder %s2885_s19, %s3202_s0 }
  0x18   :  { %p2891_p10 = pnand %p2889_p9, %p2886_p8 }
  0x1a   :  { %2894 = shalt.err (!%p2891_p10)
}
  0x1b   :  { %s2895_s24 = scalar_lea.vmem %s22_s16, 3584  ;;  %p2900_p12 = scmp.lt.s32.totalorder %s22_s16, %s22_s16 }
  0x1c   :  { %p2896_p11 = scmp.ne.s32.totalorder %s22_s16, %s2895_s24  ;;  %p2901_p13 = scmp.lt.s32.totalorder %s2895_s24, %s2895_s24 }
  0x1e   :  { %p2902_p0 = por %p2901_p13, %p2900_p12 }
  0x20   :  { %p2903_p1 = pnand %p2902_p0, %p2896_p11 }
  0x22   :  { %2906 = shalt.err (!%p2903_p1)
}
  0x23   :  { %s2985_s1 = smov 896   ;;  %s2986_s25 = smov 56  }
  0x24   :  { %27 = dma.hbm_to_vmem [thread:$0]  %s3202_s0, 3584, %s22_s16, [#allocation3], %s2985_s1, %s2985_s1, %s2986_s25  }
  0x25   :  { %s2987_s28 = smov [#allocation7]   ;;  %s2907_s9 = scalar_lea.hbm %s3205_s3, 6144 }
  0x26   :  { %s47_s29 = sshll.u32 %s2987_s28, 4  ;;  %p2908_p2 = scmp.ne.s32.totalorder %s3205_s3, %s2907_s9  ;;  %s48_s29 = int_to_ptr.vmem [resolvable:$true] %s47_s29 }
  0x27   :  { %p2911_p3 = scmp.lt.u32.totalorder %s2907_s9, %s3205_s3 }
  0x29   :  { %p2913_p4 = pnand %p2911_p3, %p2908_p2 }
  0x2b   :  { %2916 = shalt.err (!%p2913_p4)
}
  0x2c   :  { %s2917_s14 = scalar_lea.vmem %s48_s29, 6144  ;;  %p2922_p6 = scmp.lt.s32.totalorder %s48_s29, %s48_s29 }
  0x2d   :  { %p2918_p5 = scmp.ne.s32.totalorder %s48_s29, %s2917_s14  ;;  %p2923_p7 = scmp.lt.s32.totalorder %s2917_s14, %s2917_s14 }
  0x2f   :  { %p2924_p8 = por %p2923_p7, %p2922_p6 }
  0x31   :  { %p2925_p9 = pnand %p2924_p8, %p2918_p5 }
  0x33   :  { %2928 = shalt.err (!%p2925_p9)
}
  0x34   :  { %s2988_s0 = smov 128   ;;  %s2989_s15 = smov 8  }
  0x35   :  { %53 = dma.hbm_to_vmem [thread:$0]  %s3205_s3, 6144, %s48_s29, [#allocation6], %s2988_s0, %s2988_s0, %s2989_s15  }
  0x36   :  { %s2990_s18 = smov [#allocation8]   ;;  %s2929_s22 = scalar_lea.hbm %s3207_s5, 2048 }
  0x37   :  { %s61_s19 = sshll.u32 %s2990_s18, 4  ;;  %p2930_p10 = scmp.ne.s32.totalorder %s3207_s5, %s2929_s22  ;;  %s62_s19 = int_to_ptr.vmem [resolvable:$true] %s61_s19 }
  0x38   :  { %p2933_p11 = scmp.lt.u32.totalorder %s2929_s22, %s3207_s5 }
  0x3a   :  { %p2935_p12 = pnand %p2933_p11, %p2930_p10 }
  0x3c   :  { %2938 = shalt.err (!%p2935_p12)
}
  0x3d   :  { %s2939_s26 = scalar_lea.vmem %s62_s19, 2048  ;;  %p2944_p0 = scmp.lt.s32.totalorder %s62_s19, %s62_s19 }
  0x3e   :  { %p2940_p13 = scmp.ne.s32.totalorder %s62_s19, %s2939_s26  ;;  %p2945_p1 = scmp.lt.s32.totalorder %s2939_s26, %s2939_s26 }
  0x40   :  { %p2946_p2 = por %p2945_p1, %p2944_p0 }
  0x42   :  { %p2947_p3 = pnand %p2946_p2, %p2940_p13 }
  0x44   :  { %2950 = shalt.err (!%p2947_p3)
}
  0x45   :  { %s2991_s3 = smov 64   ;;  %s2992_s27 = smov 4  }
  0x46   :  { %67 = dma.hbm_to_vmem [thread:$0]  %s3207_s5, 2048, %s62_s19, [#allocation9], %s2991_s3, %s2991_s3, %s2992_s27  }
  0x47   :  { %2973 = dma.done.wait [#allocation3], 3584  }
  0x48   :  { %2974 = vsyncadd [#allocation3], 4294963712 }
  0x49   :  { %2975 = dma.done.wait [#allocation6], 24960  }
  0x4a   :  { %2976 = vsyncadd [#allocation6], 4294942336 }
  0x4b   :  { %2977 = dma.done.wait [#allocation9], 2048  }
  0x4c   :  { %2978 = vsyncadd [#allocation9], 4294965248  ;;  %v2993_v0 = vmov 0   ;;  %v2579_v1 = vld [vmem:[#allocation5 + $0x4] ss:$12 sps:$4 sm:$0xff]   ;;  %v96_v16 = vld [vmem:[#allocation2 + $0x68] sm:$0xff] }
  0x4d   :  { %1320 = vmatprep.mubr.bf16.mxu1 %v2993_v0  ;;  %v2581_v2 = vld [vmem:[#allocation5] ss:$12 sps:$4 sm:$0xff]   ;;  %1129 = vmatprep.subr.bf16.mxu0 %v2579_v1  ;;  %v2582_v3 = vld [vmem:[#allocation5 + $0x1c] ss:$12 sps:$4 sm:$0xff]   ;;  %v2584_v4 = vld [vmem:[#allocation5 + $0x18] ss:$12 sps:$4 sm:$0xff]  }
  0x4e   :  { %1130 = vmatpush1.bf16.msra.mxu0 %v2581_v2  ;;  %v2585_v5 = vld [vmem:[#allocation5 + $0x34] ss:$12 sps:$4 sm:$0xff]   ;;  %v2587_v6 = vld [vmem:[#allocation5 + $0x30] ss:$12 sps:$4 sm:$0xff]   ;;  %v2588_v7 = vld [vmem:[#allocation5 + $0x4c] ss:$12 sps:$4 sm:$0xff]  }
  0x4f   :  { %1131 = vmatprep.subr.bf16.mxu0 %v2582_v3  ;;  %v2590_v8 = vld [vmem:[#allocation5 + $0x48] ss:$12 sps:$4 sm:$0xff]   ;;  %v2591_v9 = vld [vmem:[#allocation5 + $0x64] ss:$12 sps:$4 sm:$0xff]   ;;  %v2593_v11 = vld [vmem:[#allocation5 + $0x60] ss:$12 sps:$4 sm:$0xff]  }
  0x50   :  { %v2606_v10 = vld [vmem:[#allocation5 + $0x484] ss:$12 sps:$4 sm:$0xff]   ;;  %v2610_v12 = vld [vmem:[#allocation5 + $0x480] ss:$12 sps:$4 sm:$0xff]   ;;  %v2612_v13 = vld [vmem:[#allocation5 + $0xc8] ss:$12 sps:$4 sm:$0xff]  }
  0x51   :  { %1288 = vmatprep.subr.bf16.mxu1 %v2606_v10  ;;  %v2594_v14 = vld [vmem:[#allocation5 + $0x7c] ss:$12 sps:$4 sm:$0xff]   ;;  %v89_v15 = vld [vmem:[#allocation2 + $0x30] sm:$0xff]  ;;  %vm1122_vm0 = vcmask 130048   ;;  %v2596_v17 = vld [vmem:[#allocation5 + $0x78] ss:$12 sps:$4 sm:$0xff]  }
  0x52   :  { %1132 = vmatpush1.bf16.msra.mxu0 %v2584_v4  ;;  %1289 = vmatpush1.bf16.msra.mxu1 %v2610_v12  ;;  %v3087_v18 = vpack.c.bf16 %v96_v16, %v89_v15  ;;  %v2615_v19 = vld [vmem:[#allocation5 + $0x8] ss:$12 sps:$4 sm:$0xff]   ;;  %v2617_v20 = vld [vmem:[#allocation5 + $0xe0] ss:$12 sps:$4 sm:$0xff]   ;;  %v2622_v23 = vld [vmem:[#allocation5 + $0xf8] ss:$12 sps:$4 sm:$0xff]  }
  0x53   :  { %1133 = vmatprep.subr.bf16.mxu0 %v2585_v5  ;;  %2396 = vmatprep.subr.bf16.mxu1 %v2612_v13  ;;  %v2597_v21 = vld [vmem:[#allocation5 + $0x94] ss:$12 sps:$4 sm:$0xff]   ;;  %v2599_v24 = vld [vmem:[#allocation5 + $0x90] ss:$12 sps:$4 sm:$0xff]   ;;  %v2600_v25 = vld [vmem:[#allocation5 + $0xac] ss:$12 sps:$4 sm:$0xff]  }
  0x54   :  { %v2620_v22 = vld [vmem:[#allocation5 + $0x20] ss:$12 sps:$4 sm:$0xff]   ;;  %v2625_v26 = vld [vmem:[#allocation5 + $0x38] ss:$12 sps:$4 sm:$0xff]   ;;  %v2627_v27 = vld [vmem:[#allocation5 + $0x110] ss:$12 sps:$4 sm:$0xff]  }
  0x55   :  { %2327 = vmatmul.mubr.msk.bf16.vlgmr.msra.gmra.mrb[0].mxu1 %vm1122_vm0, %v3087_v18  ;;  %v2602_v28 = vld [vmem:[#allocation5 + $0xa8] ss:$12 sps:$4 sm:$0xff]   ;;  %v2603_v29 = vld [vmem:[#allocation5 + $0xc4] ss:$12 sps:$4 sm:$0xff]   ;;  %v2605_v32 = vld [vmem:[#allocation5 + $0xc0] ss:$12 sps:$4 sm:$0xff]  }
  0x56   :  { %1134 = vmatpush1.bf16.msra.mxu0 %v2587_v6  ;;  %2397 = vmatpush3.bf16.msra.mxu1 %v2615_v19  ;;  %v2630_v30 = vld [vmem:[#allocation5 + $0x50] ss:$12 sps:$4 sm:$0xff]   ;;  %v2632_v31 = vld [vmem:[#allocation5 + $0x128] ss:$12 sps:$4 sm:$0xff]   ;;  %v2637_v35 = vld [vmem:[#allocation5 + $0x140] ss:$12 sps:$4 sm:$0xff]  }
  0x57   :  { %1135 = vmatprep.subr.bf16.mxu0 %v2588_v7  ;;  %1330 = vmatprep.mubr.bf16.mxu1 %v2993_v0  ;;  %v2608_v33 = vld [vmem:[#allocation5 + $0xdc] ss:$12 sps:$4 sm:$0xff]   ;;  %v2611_v36 = vld [vmem:[#allocation5 + $0xd8] ss:$12 sps:$4 sm:$0xff]   ;;  %v2613_v37 = vld [vmem:[#allocation5 + $0xf4] ss:$12 sps:$4 sm:$0xff]  }
  0x58   :  { %2398 = vmatprep.subr.bf16.mxu1 %v2617_v20  ;;  %v2635_v34 = vld [vmem:[#allocation5 + $0x68] ss:$12 sps:$4 sm:$0xff]   ;;  %v91_v39 = vld [vmem:[#allocation2 + $0x40] sm:$0xff]  ;;  %v110_v44 = vld [vmem:[#allocation2 + $0xd8] sm:$0xff]  ;;  %s2994_s10 = smov [#allocation10]  }
  0x59   :  { %v84_v38 = vld [vmem:[#allocation2 + $0x8] sm:$0xff]  ;;  %v2642_v42 = vld [vmem:[#allocation5 + $0x158] ss:$12 sps:$4 sm:$0xff]   ;;  %v2616_v45 = vld [vmem:[#allocation5 + $0xf0] ss:$12 sps:$4 sm:$0xff]   ;;  %s2166_s11 = sshll.u32 %s2994_s10, 4  ;;  %s2167_s11 = int_to_ptr.vmem [resolvable:$true] %s2166_s11 }
  0x5a   :  { %1136 = vmatpush1.bf16.msra.mxu0 %v2590_v8  ;;  %2399 = vmatpush3.bf16.msra.mxu1 %v2620_v22  ;;  %v2640_v40 = vld [vmem:[#allocation5 + $0x80] ss:$12 sps:$4 sm:$0xff]   ;;  %v112_v41 = vpack.c.bf16 %v91_v39, %v84_v38  ;;  %v2646_v48 = vld [vmem:[#allocation5 + $0x98] ss:$12 sps:$4 sm:$0xff]   ;;  %v2647_v49 = vld [vmem:[#allocation5 + $0x170] ss:$12 sps:$4 sm:$0xff]   ;;  %p2956_p5 = scmp.lt.s32.totalorder %s2167_s11, %s2167_s11 }
  0x5b   :  { %1137 = vmatprep.subr.bf16.mxu0 %v2591_v9  ;;  %2400 = vmatprep.subr.bf16.mxu1 %v2622_v23  ;;  %v103_v43 = vld [vmem:[#allocation2 + $0xa0] sm:$0xff]  ;;  %v2618_v47 = vld [vmem:[#allocation5 + $0x10c] ss:$12 sps:$4 sm:$0xff]   ;;  %v2621_v50 = vld [vmem:[#allocation5 + $0x108] ss:$12 sps:$4 sm:$0xff]  }
  0x5c   :  { %1161 = vmatprep.mubr.bf16.mxu0 %v112_v41  ;;  %v3092_v46 = vpack.c.bf16 %v110_v44, %v103_v43  ;;  %v2623_v51 = vld [vmem:[#allocation5 + $0x124] ss:$12 sps:$4 sm:$0xff]   ;;  %v2626_v52 = vld [vmem:[#allocation5 + $0x120] ss:$12 sps:$4 sm:$0xff]   ;;  %v2652_v55 = vld [vmem:[#allocation5 + $0x248] ss:$12 sps:$4 sm:$0xff]  }
  0x5d   :  { %v83_v53 = vld [vmem:[#allocation2] sm:$0xff]  ;;  %v2651_v54 = vld [vmem:[#allocation5 + $0xb0] ss:$12 sps:$4 sm:$0xff]   ;;  %v2656_v58 = vld [vmem:[#allocation5 + $0x188] ss:$12 sps:$4 sm:$0xff]  }
  0x5e   :  { %1138 = vmatpush1.bf16.msra.mxu0 %v2593_v11  ;;  %2401 = vmatpush3.bf16.msra.mxu1 %v2625_v26  ;;  %v90_v56 = vld [vmem:[#allocation2 + $0x38] sm:$0xff]  ;;  %v2657_v60 = vld [vmem:[#allocation5 + $0x260] ss:$12 sps:$4 sm:$0xff]   ;;  %v2641_v6 = vld [vmem:[#allocation5 + $0x168] ss:$12 sps:$4 sm:$0xff]  }
  0x5f   :  { %1139 = vmatprep.subr.bf16.mxu0 %v2594_v14  ;;  %2402 = vmatprep.subr.bf16.mxu1 %v2627_v27  ;;  %v2628_v57 = vld [vmem:[#allocation5 + $0x13c] ss:$12 sps:$4 sm:$0xff]   ;;  %v111_v59 = vpack.c.bf16 %v90_v56, %v83_v53  ;;  %v2631_v61 = vld [vmem:[#allocation5 + $0x138] ss:$12 sps:$4 sm:$0xff]   ;;  %v2633_v62 = vld [vmem:[#allocation5 + $0x154] ss:$12 sps:$4 sm:$0xff]  }
  0x60   :  { %2328 = vmatmul.mubr.msk.bf16.gmra.mrb[4].mxu1 %vm1122_vm0, %v3092_v46  ;;  %v2661_v63 = vld [vmem:[#allocation5 + $0x1a0] ss:$12 sps:$4 sm:$0xff]   ;;  %v2662_v1 = vld [vmem:[#allocation5 + $0x278] ss:$12 sps:$4 sm:$0xff]   ;;  %v2636_v2 = vld [vmem:[#allocation5 + $0x150] ss:$12 sps:$4 sm:$0xff]  }
  0x61   :  { %1373 = vmatprep.mubr.bf16.mxu1 %v112_v41  ;;  %v2638_v3 = vld [vmem:[#allocation5 + $0x16c] ss:$12 sps:$4 sm:$0xff]   ;;  %v2667_v5 = vld [vmem:[#allocation5 + $0x290] ss:$12 sps:$4 sm:$0xff]   ;;  %v2672_v10 = vld [vmem:[#allocation5 + $0x2a8] ss:$12 sps:$4 sm:$0xff]  }
  0x62   :  { %1140 = vmatpush1.bf16.msra.mxu0 %v2596_v17  ;;  %2403 = vmatpush3.bf16.msra.mxu1 %v2630_v30  ;;  %v2666_v4 = vld [vmem:[#allocation5 + $0x1b8] ss:$12 sps:$4 sm:$0xff]   ;;  %v2671_v8 = vld [vmem:[#allocation5 + $0x1d0] ss:$12 sps:$4 sm:$0xff]   ;;  %v2643_v9 = vld [vmem:[#allocation5 + $0x180] ss:$12 sps:$4 sm:$0xff]  }
  0x63   :  { %1141 = vmatprep.subr.bf16.mxu0 %v2597_v21  ;;  %2404 = vmatprep.subr.bf16.mxu1 %v2632_v31  ;;  %v2645_v7 = vld [vmem:[#allocation5 + $0x184] ss:$12 sps:$4 sm:$0xff]   ;;  %v2650_v11 = vld [vmem:[#allocation5 + $0x19c] ss:$12 sps:$4 sm:$0xff]   ;;  %v2677_v17 = vld [vmem:[#allocation5 + $0x2c0] ss:$12 sps:$4 sm:$0xff]  }
  0x64   :  { %v98_v12 = vld [vmem:[#allocation2 + $0x78] sm:$0xff]  ;;  %v105_v13 = vld [vmem:[#allocation2 + $0xb0] sm:$0xff]  ;;  %v104_v20 = vld [vmem:[#allocation2 + $0xa8] sm:$0xff] }
  0x65   :  { %v2676_v14 = vld [vmem:[#allocation5 + $0x1e8] ss:$12 sps:$4 sm:$0xff]   ;;  %v119_v15 = vpack.c.bf16 %v105_v13, %v98_v12  ;;  %v2648_v16 = vld [vmem:[#allocation5 + $0x198] ss:$12 sps:$4 sm:$0xff]   ;;  %v2681_v23 = vld [vmem:[#allocation5 + $0x200] ss:$12 sps:$4 sm:$0xff]  }
  0x66   :  { %1142 = vmatpush1.bf16.msra.mxu0 %v2599_v24  ;;  %2405 = vmatpush3.bf16.msra.mxu1 %v2635_v34  ;;  %v97_v19 = vld [vmem:[#allocation2 + $0x70] sm:$0xff]  ;;  %v2660_v26 = vld [vmem:[#allocation5 + $0x1cc] ss:$12 sps:$4 sm:$0xff]   ;;  %v2670_v39 = vld [vmem:[#allocation5 + $0x1fc] ss:$12 sps:$4 sm:$0xff]  }
  0x67   :  { %1143 = vmatprep.subr.bf16.mxu0 %v2600_v25  ;;  %2406 = vmatprep.subr.bf16.mxu1 %v2637_v35  ;;  %v2655_v21 = vld [vmem:[#allocation5 + $0x1b4] ss:$12 sps:$4 sm:$0xff]   ;;  %v118_v22 = vpack.c.bf16 %v104_v20, %v97_v19  ;;  %v2653_v24 = vld [vmem:[#allocation5 + $0x1b0] ss:$12 sps:$4 sm:$0xff]   ;;  %v2682_v25 = vld [vmem:[#allocation5 + $0x2d8] ss:$12 sps:$4 sm:$0xff]  }
  0x68   :  { %v86_v27 = vld [vmem:[#allocation2 + $0x18] sm:$0xff]  ;;  %v2658_v31 = vld [vmem:[#allocation5 + $0x1c8] ss:$12 sps:$4 sm:$0xff]   ;;  %v2663_v38 = vld [vmem:[#allocation5 + $0x1e0] ss:$12 sps:$4 sm:$0xff]  }
  0x69   :  { %v2691_v34 = vld [vmem:[#allocation5 + $0x230] ss:$12 sps:$4 sm:$0xff]   ;;  %v2696_v41 = vld [vmem:[#allocation5 + $0x308] ss:$12 sps:$4 sm:$0xff]   ;;  %v2668_v43 = vld [vmem:[#allocation5 + $0x1f8] ss:$12 sps:$4 sm:$0xff]  }
  0x6a   :  { %1144 = vmatpush1.bf16.msra.mxu0 %v2602_v28  ;;  %2407 = vmatpush3.bf16.msra.mxu1 %v2640_v40  ;;  %v93_v28 = vld [vmem:[#allocation2 + $0x50] sm:$0xff]  ;;  %v100_v56 = vld [vmem:[#allocation2 + $0x88] sm:$0xff]  ;;  %v2726_v13 = vld [vmem:[#allocation5 + $0x398] ss:$12 sps:$4 sm:$0xff]  }
  0x6b   :  { %1145 = vmatprep.subr.bf16.mxu0 %v2603_v29  ;;  %2408 = vmatprep.subr.bf16.mxu1 %v2642_v42  ;;  %v2686_v29 = vld [vmem:[#allocation5 + $0x218] ss:$12 sps:$4 sm:$0xff]   ;;  %v114_v30 = vpack.c.bf16 %v93_v28, %v86_v27  ;;  %v85_v35 = vld [vmem:[#allocation2 + $0x10] sm:$0xff]  ;;  %v2697_v42 = vld [vmem:[#allocation5 + $0x3e0] ss:$12 sps:$4 sm:$0xff]  }
  0x6c   :  { %v2675_v44 = vld [vmem:[#allocation5 + $0x214] ss:$12 sps:$4 sm:$0xff]   ;;  %v2685_v53 = vld [vmem:[#allocation5 + $0x244] ss:$12 sps:$4 sm:$0xff]   ;;  %v94_v19 = vld [vmem:[#allocation2 + $0x58] sm:$0xff] }
  0x6d   :  { %v2698_v12 = vld [vmem:[#allocation5 + $0x288] ss:$12 sps:$4 sm:$0xff]   ;;  %v102_v20 = vld [vmem:[#allocation2 + $0x98] sm:$0xff] }
  0x6e   :  { %1146 = vmatpush1.bf16.msra.mxu0 %v2605_v32  ;;  %2409 = vmatpush3.bf16.msra.mxu1 %v2646_v48  ;;  %v2687_v32 = vld [vmem:[#allocation5 + $0x2f0] ss:$12 sps:$4 sm:$0xff]   ;;  %v2708_v27 = vld [vmem:[#allocation5 + $0x2b8] ss:$12 sps:$4 sm:$0xff]   ;;  %v2715_v28 = vld [vmem:[#allocation5 + $0x2d4] ss:$12 sps:$4 sm:$0xff]  }
  0x6f   :  { %1147 = vmatprep.subr.bf16.mxu0 %v2608_v33  ;;  %2410 = vmatprep.subr.bf16.mxu1 %v2647_v49  ;;  %v2665_v33 = vld [vmem:[#allocation5 + $0x1e4] ss:$12 sps:$4 sm:$0xff]   ;;  %v2680_v49 = vld [vmem:[#allocation5 + $0x22c] ss:$12 sps:$4 sm:$0xff]  }
  0x70   :  { %v2673_v48 = vld [vmem:[#allocation5 + $0x210] ss:$12 sps:$4 sm:$0xff]  }
  0x72   :  { %1148 = vmatpush1.bf16.msra.mxu0 %v2611_v36  ;;  %2411 = vmatpush3.bf16.msra.mxu1 %v2651_v54  ;;  %v92_v36 = vld [vmem:[#allocation2 + $0x48] sm:$0xff]  ;;  %v2711_v54 = vld [vmem:[#allocation5 + $0x350] ss:$12 sps:$4 sm:$0xff]  }
  0x73   :  { %1149 = vmatprep.subr.bf16.mxu0 %v2613_v37  ;;  %2424 = vmatprep.subr.bf16.mxu1 %v2652_v55  ;;  %v2692_v37 = vld [vmem:[#allocation5 + $0x3c8] ss:$12 sps:$4 sm:$0xff]   ;;  %v3096_v40 = vpack.c.bf16 %v92_v36, %v85_v35  ;;  %v2725_v35 = vld [vmem:[#allocation5 + $0x304] ss:$12 sps:$4 sm:$0xff]   ;;  %v2723_v36 = vld [vmem:[#allocation5 + $0x300] ss:$12 sps:$4 sm:$0xff]  }
  0x74   :  { %v2712_v55 = vld [vmem:[#allocation5 + $0x428] ss:$12 sps:$4 sm:$0xff]  }
  0x75   :  { %1374 = vmatmul.mubr.bf16.vlgmr.msra.gmra.mrb[8].mxu1 %v111_v59 }
  0x76   :  { %1150 = vmatpush1.bf16.msra.mxu0 %v2616_v45  ;;  %2425 = vmatpush3.bf16.msra.mxu1 %v2656_v58  ;;  %v2701_v45 = vld [vmem:[#allocation5 + $0x320] ss:$12 sps:$4 sm:$0xff]  }
  0x77   :  { %1151 = vmatprep.subr.bf16.mxu0 %v2618_v47  ;;  %2426 = vmatprep.subr.bf16.mxu1 %v2657_v60  ;;  %v2702_v47 = vld [vmem:[#allocation5 + $0x3f8] ss:$12 sps:$4 sm:$0xff]  }
  0x78   :  { %1381 = vmatprep.mubr.bf16.mxu1 %v119_v15  ;;  %v106_v60 = vld [vmem:[#allocation2 + $0xb8] sm:$0xff] }
  0x7a   :  { %1152 = vmatpush1.bf16.msra.mxu0 %v2621_v50  ;;  %2427 = vmatpush3.bf16.msra.mxu1 %v2661_v63  ;;  %v2678_v50 = vld [vmem:[#allocation5 + $0x228] ss:$12 sps:$4 sm:$0xff]  }
  0x7b   :  { %1153 = vmatprep.subr.bf16.mxu0 %v2623_v51  ;;  %2428 = vmatprep.subr.bf16.mxu1 %v2662_v1  ;;  %v2706_v51 = vld [vmem:[#allocation5 + $0x338] ss:$12 sps:$4 sm:$0xff]   ;;  %v2690_v63 = vld [vmem:[#allocation5 + $0x25c] ss:$12 sps:$4 sm:$0xff]  }
  0x7c   :  { %v2716_v1 = vld [vmem:[#allocation5 + $0x368] ss:$12 sps:$4 sm:$0xff]  }
  0x7d   :  { %1382 = vmatmul.mubr.bf16.gmra.mrb[12].mxu1 %v118_v22 }
  0x7e   :  { %1154 = vmatpush1.bf16.msra.mxu0 %v2626_v52  ;;  %2429 = vmatpush3.bf16.msra.mxu1 %v2666_v4  ;;  %v2707_v52 = vld [vmem:[#allocation5 + $0x410] ss:$12 sps:$4 sm:$0xff]   ;;  %v2695_v4 = vld [vmem:[#allocation5 + $0x274] ss:$12 sps:$4 sm:$0xff]  }
  0x7f   :  { %1155 = vmatprep.subr.bf16.mxu0 %v2628_v57  ;;  %2430 = vmatprep.subr.bf16.mxu1 %v2667_v5  ;;  %v107_v57 = vld [vmem:[#allocation2 + $0xc0] sm:$0xff] }
  0x80   :  { %1422 = vmatprep.mubr.bf16.mxu1 %v114_v30  ;;  %v3099_v58 = vpack.c.bf16 %v107_v57, %v100_v56  ;;  %v2721_v5 = vld [vmem:[#allocation5 + $0x380] ss:$12 sps:$4 sm:$0xff]   ;;  %v2760_v57 = vld [vmem:[#allocation5 + $0x408] ss:$12 sps:$4 sm:$0xff]  }
  0x81   :  { %v2762_v56 = vld [vmem:[#allocation5 + $0x40c] ss:$12 sps:$4 sm:$0xff]  }
  0x82   :  { %1156 = vmatpush1.bf16.msra.mxu0 %v2631_v61  ;;  %2431 = vmatpush3.bf16.msra.mxu1 %v2671_v8  ;;  %v2683_v61 = vld [vmem:[#allocation5 + $0x240] ss:$12 sps:$4 sm:$0xff]   ;;  %v2722_v8 = vld [vmem:[#allocation5 + $0x458] ss:$12 sps:$4 sm:$0xff]  }
  0x83   :  { %1157 = vmatprep.subr.bf16.mxu0 %v2633_v62  ;;  %2432 = vmatprep.subr.bf16.mxu1 %v2672_v10  ;;  %v2693_v10 = vld [vmem:[#allocation5 + $0x270] ss:$12 sps:$4 sm:$0xff]  }
  0x86   :  { %1158 = vmatpush1.bf16.msra.mxu0 %v2636_v2  ;;  %2433 = vmatpush3.bf16.msra.mxu1 %v2676_v14  ;;  %v2717_v2 = vld [vmem:[#allocation5 + $0x440] ss:$12 sps:$4 sm:$0xff]   ;;  %v2705_v14 = vld [vmem:[#allocation5 + $0x2a4] ss:$12 sps:$4 sm:$0xff]  }
  0x87   :  { %1159 = vmatprep.subr.bf16.mxu0 %v2638_v3  ;;  %2434 = vmatprep.subr.bf16.mxu1 %v2677_v17  ;;  %v2688_v3 = vld [vmem:[#allocation5 + $0x258] ss:$12 sps:$4 sm:$0xff]  }
  0x88   :  { %v87_v17 = vld [vmem:[#allocation2 + $0x20] sm:$0xff] }
  0x8a   :  { %1160 = vmatpush1.bf16.msra.mxu0 %v2641_v6  ;;  %2435 = vmatpush3.bf16.msra.mxu1 %v2681_v23  ;;  %v88_v6 = vld [vmem:[#allocation2 + $0x28] sm:$0xff] }
  0x8b   :  { %1182 = vmatprep.subr.bf16.mxu0 %v2645_v7  ;;  %2436 = vmatprep.subr.bf16.mxu1 %v2682_v25  ;;  %v95_v7 = vld [vmem:[#allocation2 + $0x60] sm:$0xff]  ;;  %v3108_v25 = vpack.c.bf16 %v94_v19, %v87_v17  ;;  %v2798_v19 = vld [vmem:[#allocation7 + $0x74] ss:$8 sps:$4 sm:$0xff]  }
  0x8c   :  { %v2703_v23 = vld [vmem:[#allocation5 + $0x2a0] ss:$12 sps:$4 sm:$0xff]  }
  0x8d   :  { %1162 = vmatmul.mubr.bf16.vlgmr.msra.gmra.mrb[0].mxu0 %v111_v59  ;;  %v99_v59 = vld [vmem:[#allocation2 + $0x80] sm:$0xff] }
  0x8e   :  { %1183 = vmatpush1.bf16.msra.mxu0 %v2643_v9  ;;  %1171 = vmatprep.mubr.bf16.mxu0 %v119_v15  ;;  %v3101_v62 = vpack.c.bf16 %v106_v60, %v99_v59  ;;  %v3105_v9 = vpack.c.bf16 %v95_v7, %v88_v6  ;;  %v2727_v15 = vld [vmem:[#allocation5 + $0x470] ss:$12 sps:$4 sm:$0xff]   ;;  %v2763_v59 = vld [vmem:[#allocation5 + $0x420] ss:$12 sps:$4 sm:$0xff]  }
  0x8f   :  { %1184 = vmatprep.subr.bf16.mxu0 %v2650_v11  ;;  %2437 = vmatpush3.bf16.msra.mxu1 %v2686_v29  ;;  %v2700_v11 = vld [vmem:[#allocation5 + $0x28c] ss:$12 sps:$4 sm:$0xff]   ;;  %v101_v29 = vld [vmem:[#allocation2 + $0x90] sm:$0xff]  ;;  %v2768_v60 = vld [vmem:[#allocation5 + $0x43c] ss:$12 sps:$4 sm:$0xff]  }
  0x90   :  { %2438 = vmatprep.subr.bf16.mxu1 %v2687_v32  ;;  %v2720_v32 = vld [vmem:[#allocation5 + $0x2ec] ss:$12 sps:$4 sm:$0xff]  }
  0x91   :  { %v2780_v6 = vld [vmem:[#allocation7 + $0x14] ss:$8 sps:$4 sm:$0xff]   ;;  %v2781_v7 = vld [vmem:[#allocation7 + $0x20] ss:$8 sps:$4 sm:$0xff]  }
  0x92   :  { %1185 = vmatpush1.bf16.msra.mxu0 %v2648_v16  ;;  %v2731_v16 = vld [vmem:[#allocation5 + $0x3b0] ss:$12 sps:$4 sm:$0xff]  }
  0x93   :  { %1186 = vmatprep.subr.bf16.mxu0 %v2655_v21  ;;  %2439 = vmatpush3.bf16.msra.mxu1 %v2691_v34  ;;  %v109_v21 = vld [vmem:[#allocation2 + $0xd0] sm:$0xff] }
  0x94   :  { %2452 = vmatprep.subr.bf16.mxu1 %v2692_v37  ;;  %v2718_v34 = vld [vmem:[#allocation5 + $0x2e8] ss:$12 sps:$4 sm:$0xff]  }
  0x95   :  { %1172 = vmatmul.mubr.bf16.gmra.mrb[4].mxu0 %v118_v22  ;;  %v2741_v22 = vld [vmem:[#allocation5 + $0x488] ss:$12 sps:$4 sm:$0xff]  }
  0x96   :  { %1187 = vmatpush1.bf16.msra.mxu0 %v2653_v24  ;;  %1214 = vmatprep.mubr.bf16.mxu0 %v114_v30  ;;  %v2710_v24 = vld [vmem:[#allocation5 + $0x2bc] ss:$12 sps:$4 sm:$0xff]  }
  0x97   :  { %1188 = vmatprep.subr.bf16.mxu0 %v2660_v26  ;;  %1423 = vmatmul.mubr.bf16.vlgmr.msra.gmra.mrb[16].mxu1 %v3096_v40  ;;  %v3110_v26 = vpack.c.bf16 %v109_v21, %v102_v20  ;;  %v108_v30 = vld [vmem:[#allocation2 + $0xc8] sm:$0xff] }
  0x98   :  { %2453 = vmatpush3.bf16.msra.mxu1 %v2696_v41  ;;  %1430 = vmatprep.mubr.bf16.mxu1 %v3099_v58  ;;  %v2730_v37 = vld [vmem:[#allocation5 + $0x31c] ss:$12 sps:$4 sm:$0xff]  }
  0x99   :  { %2454 = vmatprep.subr.bf16.mxu1 %v2697_v42  ;;  %v2732_v41 = vld [vmem:[#allocation5 + $0x330] ss:$12 sps:$4 sm:$0xff]   ;;  %v2737_v42 = vld [vmem:[#allocation5 + $0x34c] ss:$12 sps:$4 sm:$0xff]  }
  0x9a   :  { %1189 = vmatpush1.bf16.msra.mxu0 %v2658_v31  ;;  %v2713_v31 = vld [vmem:[#allocation5 + $0x2d0] ss:$12 sps:$4 sm:$0xff]  }
  0x9b   :  { %1190 = vmatprep.subr.bf16.mxu0 %v2665_v33  ;;  %v3114_v33 = vpack.c.bf16 %v108_v30, %v101_v29  ;;  %v2805_v29 = vld [vmem:[#allocation7 + $0xa0] ss:$8 sps:$4 sm:$0xff]   ;;  %v2810_v30 = vld [vmem:[#allocation7 + $0xb4] ss:$8 sps:$4 sm:$0xff]  }
  0x9c   :  { %2455 = vmatpush3.bf16.msra.mxu1 %v2701_v45  ;;  %v2742_v45 = vld [vmem:[#allocation5 + $0x378] ss:$12 sps:$4 sm:$0xff]  }
  0x9d   :  { %2456 = vmatprep.subr.bf16.mxu1 %v2702_v47  ;;  %v2747_v47 = vld [vmem:[#allocation5 + $0x394] ss:$12 sps:$4 sm:$0xff]  }
  0x9e   :  { %1191 = vmatpush1.bf16.msra.mxu0 %v2663_v38  ;;  %v2728_v38 = vld [vmem:[#allocation5 + $0x318] ss:$12 sps:$4 sm:$0xff]  }
  0x9f   :  { %1192 = vmatprep.subr.bf16.mxu0 %v2670_v39  ;;  %1431 = vmatmul.mubr.bf16.gmra.mrb[20].mxu1 %v3101_v62  ;;  %v2734_v39 = vld [vmem:[#allocation5 + $0x334] ss:$12 sps:$4 sm:$0xff]  }
  0xa0   :  { %2457 = vmatpush3.bf16.msra.mxu1 %v2706_v51  ;;  %1471 = vmatprep.mubr.bf16.mxu1 %v3105_v9  ;;  %v2751_v51 = vld [vmem:[#allocation5 + $0x3c0] ss:$12 sps:$4 sm:$0xff]  }
  0xa1   :  { %2458 = vmatprep.subr.bf16.mxu1 %v2707_v52  ;;  %v2756_v52 = vld [vmem:[#allocation5 + $0x3dc] ss:$12 sps:$4 sm:$0xff]  }
  0xa2   :  { %1193 = vmatpush1.bf16.msra.mxu0 %v2668_v43  ;;  %v2735_v43 = vld [vmem:[#allocation5 + $0x348] ss:$12 sps:$4 sm:$0xff]  }
  0xa3   :  { %1194 = vmatprep.subr.bf16.mxu0 %v2675_v44  ;;  %v2744_v44 = vld [vmem:[#allocation5 + $0x37c] ss:$12 sps:$4 sm:$0xff]  }
  0xa4   :  { %2459 = vmatpush3.bf16.msra.mxu1 %v2711_v54  ;;  %v2759_v54 = vld [vmem:[#allocation5 + $0x3f4] ss:$12 sps:$4 sm:$0xff]  }
  0xa5   :  { %2460 = vmatprep.subr.bf16.mxu1 %v2712_v55  ;;  %v2757_v55 = vld [vmem:[#allocation5 + $0x3f0] ss:$12 sps:$4 sm:$0xff]  }
  0xa6   :  { %1195 = vmatpush1.bf16.msra.mxu0 %v2673_v48  ;;  %v2750_v48 = vld [vmem:[#allocation5 + $0x3ac] ss:$12 sps:$4 sm:$0xff]  }
  0xa7   :  { %1196 = vmatprep.subr.bf16.mxu0 %v2680_v49  ;;  %v2748_v49 = vld [vmem:[#allocation5 + $0x3a8] ss:$12 sps:$4 sm:$0xff]  }
  0xa8   :  { %2461 = vmatpush3.bf16.msra.mxu1 %v2716_v1  ;;  %v2774_v1 = vld [vmem:[#allocation5 + $0x46c] ss:$12 sps:$4 sm:$0xff]  }
  0xa9   :  { %2462 = vmatprep.subr.bf16.mxu1 %v2717_v2  ;;  %v2775_v2 = vld [vmem:[#allocation7] ss:$8 sps:$4 sm:$0xff]  }
  0xaa   :  { %1197 = vmatpush1.bf16.msra.mxu0 %v2678_v50  ;;  %v2753_v50 = vld [vmem:[#allocation5 + $0x3c4] ss:$12 sps:$4 sm:$0xff]  }
  0xab   :  { %1198 = vmatprep.subr.bf16.mxu0 %v2685_v53  ;;  %v2754_v53 = vld [vmem:[#allocation5 + $0x3d8] ss:$12 sps:$4 sm:$0xff]  }
  0xac   :  { %2463 = vmatpush3.bf16.msra.mxu1 %v2721_v5  ;;  %v2778_v5 = vld [vmem:[#allocation7 + $0x10] ss:$8 sps:$4 sm:$0xff]  }
  0xad   :  { %2464 = vmatprep.subr.bf16.mxu1 %v2722_v8  ;;  %v2783_v8 = vld [vmem:[#allocation7 + $0x24] ss:$8 sps:$4 sm:$0xff]  }
  0xae   :  { %1199 = vmatpush1.bf16.msra.mxu0 %v2683_v61  ;;  %v2766_v61 = vld [vmem:[#allocation5 + $0x438] ss:$12 sps:$4 sm:$0xff]  }
  0xaf   :  { %1200 = vmatprep.subr.bf16.mxu0 %v2690_v63  ;;  %v2769_v63 = vld [vmem:[#allocation5 + $0x450] ss:$12 sps:$4 sm:$0xff]  }
  0xb0   :  { %2465 = vmatpush3.bf16.msra.mxu1 %v2726_v13  ;;  %v2792_v13 = vld [vmem:[#allocation7 + $0x54] ss:$8 sps:$4 sm:$0xff]  }
  0xb1   :  { %2466 = vmatprep.subr.bf16.mxu1 %v2727_v15  ;;  %v2795_v15 = vld [vmem:[#allocation7 + $0x64] ss:$8 sps:$4 sm:$0xff]  }
  0xb2   :  { %1201 = vmatpush1.bf16.msra.mxu0 %v2688_v3  ;;  %v2777_v3 = vld [vmem:[#allocation7 + $0x4] ss:$8 sps:$4 sm:$0xff]  }
  0xb3   :  { %1202 = vmatprep.subr.bf16.mxu0 %v2695_v4  ;;  %v2772_v4 = vld [vmem:[#allocation5 + $0x468] ss:$12 sps:$4 sm:$0xff]  }
  0xb4   :  { %2467 = vmatpush3.bf16.msra.mxu1 %v2731_v16  ;;  %v2793_v16 = vld [vmem:[#allocation7 + $0x60] ss:$8 sps:$4 sm:$0xff]  }
  0xb5   :  { %2511 = vmatprep.subr.bf16.mxu1 %v2741_v22 }
  0xb6   :  { %1203 = vmatpush1.bf16.msra.mxu0 %v2693_v10  ;;  %v2786_v10 = vld [vmem:[#allocation7 + $0x34] ss:$8 sps:$4 sm:$0xff]  }
  0xb7   :  { %1204 = vmatprep.subr.bf16.mxu0 %v2700_v11  ;;  %1472 = vmatmul.mubr.bf16.vlgmr.msra.gmra.mrb[24].mxu1 %v3108_v25  ;;  %v2787_v11 = vld [vmem:[#allocation7 + $0x40] ss:$8 sps:$4 sm:$0xff]  }
  0xb8   :  { %1479 = vmatprep.mubr.bf16.mxu1 %v3110_v26  ;;  %2512 = vmatpush3.bf16.msra.mxu1 %v2741_v22 }
  0xb9   :  { %1855 = vmatprep.subr.bf16.mxu1 %v2777_v3 }
  0xba   :  { %1205 = vmatpush1.bf16.msra.mxu0 %v2698_v12  ;;  %v2789_v12 = vld [vmem:[#allocation7 + $0x44] ss:$8 sps:$4 sm:$0xff]  }
  0xbb   :  { %1206 = vmatprep.subr.bf16.mxu0 %v2705_v14  ;;  %v2790_v14 = vld [vmem:[#allocation7 + $0x50] ss:$8 sps:$4 sm:$0xff]  }
  0xbe   :  { %1207 = vmatpush1.bf16.msra.mxu0 %v2703_v23  ;;  %v2796_v23 = vld [vmem:[#allocation7 + $0x70] ss:$8 sps:$4 sm:$0xff]  }
  0xbf   :  { %1208 = vmatprep.subr.bf16.mxu0 %v2710_v24  ;;  %1480 = vmatmul.mubr.bf16.gmra.mrb[28].mxu1 %v3114_v33  ;;  %v2801_v24 = vld [vmem:[#allocation7 + $0x84] ss:$8 sps:$4 sm:$0xff]  }
  0xc0   :  { %2513 = vmatprep.mubr.msk.bf16.mxu1 %vm1122_vm0, %v3087_v18  ;;  %v2740_v18 = vld [vmem:[#allocation5 + $0x364] ss:$12 sps:$4 sm:$0xff]  }
  0xc2   :  { %1209 = vmatpush1.bf16.msra.mxu0 %v2708_v27  ;;  %v2802_v27 = vld [vmem:[#allocation7 + $0x90] ss:$8 sps:$4 sm:$0xff]  }
  0xc3   :  { %1210 = vmatprep.subr.bf16.mxu0 %v2715_v28  ;;  %v2807_v28 = vld [vmem:[#allocation7 + $0xa4] ss:$8 sps:$4 sm:$0xff]  }
  0xc6   :  { %1211 = vmatpush1.bf16.msra.mxu0 %v2713_v31  ;;  %v2808_v31 = vld [vmem:[#allocation7 + $0xb0] ss:$8 sps:$4 sm:$0xff]  }
  0xc7   :  { %1212 = vmatprep.subr.bf16.mxu0 %v2720_v32  ;;  %2514 = vmatmul.mubr.msk.bf16.vlgmr.msra.gmra.mrb[32].mxu1 %vm1122_vm0, %v3092_v46  ;;  %v2745_v46 = vld [vmem:[#allocation5 + $0x390] ss:$12 sps:$4 sm:$0xff]  }
  0xc8   :  { %1856 = vmatpush1.bf16.msra.mxu1 %v2775_v2  ;;  %v2813_v32 = vld [vmem:[#allocation7 + $0xc4] ss:$8 sps:$4 sm:$0xff]  }
  0xc9   :  { %1857 = vmatprep.subr.bf16.mxu1 %v2780_v6 }
  0xca   :  { %1213 = vmatpush1.bf16.msra.mxu0 %v2718_v34 }
  0xcb   :  { %1235 = vmatprep.subr.bf16.mxu0 %v2725_v35  ;;  %v2811_v35 = vld [vmem:[#allocation7 + $0xc0] ss:$8 sps:$4 sm:$0xff]  }
  0xcc   :  { %1858 = vmatpush1.bf16.msra.mxu1 %v2778_v5 }
  0xcd   :  { %1215 = vmatmul.mubr.bf16.vlgmr.msra.gmra.mrb[0].mxu0 %v3096_v40  ;;  %v2738_v40 = vld [vmem:[#allocation5 + $0x360] ss:$12 sps:$4 sm:$0xff]   ;;  %1859 = vmatprep.subr.bf16.mxu1 %v2783_v8 }
  0xce   :  { %1236 = vmatpush1.bf16.msra.mxu0 %v2723_v36  ;;  %1224 = vmatprep.mubr.bf16.mxu0 %v3099_v58  ;;  %v2765_v58 = vld [vmem:[#allocation5 + $0x424] ss:$12 sps:$4 sm:$0xff]  }
  0xcf   :  { %1237 = vmatprep.subr.bf16.mxu0 %v2730_v37 }
  0xd0   :  { %1860 = vmatpush1.bf16.msra.mxu1 %v2781_v7 }
  0xd1   :  { %1861 = vmatprep.subr.bf16.mxu1 %v2786_v10 }
  0xd2   :  { %1238 = vmatpush1.bf16.msra.mxu0 %v2728_v38 }
  0xd3   :  { %1239 = vmatprep.subr.bf16.mxu0 %v2734_v39 }
  0xd5   :  { %1225 = vmatmul.mubr.bf16.gmra.mrb[4].mxu0 %v3101_v62  ;;  %v2771_v62 = vld [vmem:[#allocation5 + $0x454] ss:$12 sps:$4 sm:$0xff]  }
  0xd6   :  { %1240 = vmatpush1.bf16.msra.mxu0 %v2732_v41  ;;  %1267 = vmatprep.mubr.bf16.mxu0 %v3105_v9  ;;  %v2784_v9 = vld [vmem:[#allocation7 + $0x30] ss:$8 sps:$4 sm:$0xff]  }
  0xd7   :  { %1241 = vmatprep.subr.bf16.mxu0 %v2737_v42  ;;  %1862 = vmatpush1.bf16.msra.mxu1 %v2784_v9 }
  0xd8   :  { %1863 = vmatprep.subr.bf16.mxu1 %v2789_v12 }
  0xda   :  { %1242 = vmatpush1.bf16.msra.mxu0 %v2735_v43 }
  0xdb   :  { %1243 = vmatprep.subr.bf16.mxu0 %v2740_v18  ;;  %1864 = vmatpush1.bf16.msra.mxu1 %v2787_v11 }
  0xdc   :  { %1865 = vmatprep.subr.bf16.mxu1 %v2792_v13 }
  0xde   :  { %1244 = vmatpush1.bf16.msra.mxu0 %v2738_v40  ;;  %v2816_v40 = vld [vmem:[#allocation7 + $0xd4] ss:$8 sps:$4 sm:$0xff]  }
  0xdf   :  { %1245 = vmatprep.subr.bf16.mxu0 %v2744_v44  ;;  %1866 = vmatpush1.bf16.msra.mxu1 %v2790_v14  ;;  %v2814_v44 = vld [vmem:[#allocation7 + $0xd0] ss:$8 sps:$4 sm:$0xff]  }
  0xe0   :  { %1867 = vmatprep.subr.bf16.mxu1 %v2795_v15 }
  0xe2   :  { %1246 = vmatpush1.bf16.msra.mxu0 %v2742_v45  ;;  %v323_v45 = vlaneseq }
  0xe3   :  { %1247 = vmatprep.subr.bf16.mxu0 %v2747_v47  ;;  %1868 = vmatpush1.bf16.msra.mxu1 %v2793_v16  ;;  %v2819_v47 = vld [vmem:[#allocation7 + $0xe4] ss:$8 sps:$4 sm:$0xff]  }
  0xe4   :  { %1869 = vmatprep.subr.bf16.mxu1 %v2798_v19 }
  0xe6   :  { %1248 = vmatpush1.bf16.msra.mxu0 %v2745_v46  ;;  %v2817_v46 = vld [vmem:[#allocation7 + $0xe0] ss:$8 sps:$4 sm:$0xff]  }
  0xe7   :  { %1249 = vmatprep.subr.bf16.mxu0 %v2750_v48  ;;  %1870 = vmatpush1.bf16.msra.mxu1 %v2796_v23 }
  0xe8   :  { %1871 = vmatprep.subr.bf16.mxu1 %v2801_v24 }
  0xea   :  { %1250 = vmatpush1.bf16.msra.mxu0 %v2748_v49 }
  0xeb   :  { %1251 = vmatprep.subr.bf16.mxu0 %v2753_v50  ;;  %v3144_v50 = vshrl.u32 %v323_v45, 7  ;;  %v2853_v45 = vld [vmem:[#allocation8 + $0x58] sm:$0xff]  }
  0xee   :  { %1252 = vmatpush1.bf16.msra.mxu0 %v2751_v51 }
  0xef   :  { %1253 = vmatprep.subr.bf16.mxu0 %v2756_v52 }
  0xf2   :  { %1254 = vmatpush1.bf16.msra.mxu0 %v2754_v53  ;;  %v2822_v53 = vld [vmem:[#allocation7 + $0xf4] ss:$8 sps:$4 sm:$0xff]  }
  0xf3   :  { %1255 = vmatprep.subr.bf16.mxu0 %v2759_v54 }
  0xf6   :  { %1256 = vmatpush1.bf16.msra.mxu0 %v2757_v55  ;;  %v2820_v55 = vld [vmem:[#allocation7 + $0xf0] ss:$8 sps:$4 sm:$0xff]  }
  0xf7   :  { %1257 = vmatprep.subr.bf16.mxu0 %v2762_v56 }
  0xfa   :  { %1258 = vmatpush1.bf16.msra.mxu0 %v2760_v57  ;;  %v333_v57 = vsub.s32 2, %v3144_v50 }
  0xfb   :  { %1259 = vmatprep.subr.bf16.mxu0 %v2765_v58  ;;  %v2825_v58 = vld [vmem:[#allocation7 + $0x104] ss:$8 sps:$4 sm:$0xff]  }
  0xfe   :  { %1260 = vmatpush1.bf16.msra.mxu0 %v2763_v59  ;;  %v3150_v59 = vld [vmem:[%s3204_s2] sm:$0x7] }
  0xff   :  { %1261 = vmatprep.subr.bf16.mxu0 %v2768_v60  ;;  %v334_v60 = vrot.slane %v3150_v59, %v333_v57  ;;  %v2856_v57 = vld [vmem:[#allocation8 + $0x20] sm:$0xff]  }
 0x102   :  { %1262 = vmatpush1.bf16.msra.mxu0 %v2766_v61 }
 0x103   :  { %1263 = vmatprep.subr.bf16.mxu0 %v2771_v62 }
 0x106   :  { %1264 = vmatpush1.bf16.msra.mxu0 %v2769_v63 }
 0x107   :  { %1265 = vmatprep.subr.bf16.mxu0 %v2774_v1 }
 0x10a   :  { %1266 = vmatpush1.bf16.msra.mxu0 %v2772_v4 }
 0x10d   :  { %1268 = vmatmul.mubr.bf16.vlgmr.msra.gmra.mrb[0].mxu0 %v3108_v25  ;;  %v2799_v25 = vld [vmem:[#allocation7 + $0x80] ss:$8 sps:$4 sm:$0xff]  }
 0x10e   :  { %1277 = vmatprep.mubr.bf16.mxu0 %v3110_v26  ;;  %v2804_v26 = vld [vmem:[#allocation7 + $0x94] ss:$8 sps:$4 sm:$0xff]   ;;  %1872 = vmatpush1.bf16.msra.mxu1 %v2799_v25 }
 0x10f   :  { %1873 = vmatprep.subr.bf16.mxu1 %v2804_v26 }
 0x112   :  { %1874 = vmatpush1.bf16.msra.mxu1 %v2802_v27 }
 0x113   :  { %1875 = vmatprep.subr.bf16.mxu1 %v2807_v28  ;;  %v2847_v28 = vld [vmem:[#allocation8 + $0x40] sm:$0xff]  }
 0x114   :  { %2483 = vmatprep.subr.bf16.mxu0 %v2847_v28 }
 0x115   :  { %1278 = vmatmul.mubr.bf16.gmra.mrb[4].mxu0 %v3114_v33 }
 0x116   :  { %1876 = vmatpush1.bf16.msra.mxu1 %v2805_v29  ;;  %v2848_v29 = vld [vmem:[#allocation8] sm:$0xff]  }
 0x117   :  { %1877 = vmatprep.subr.bf16.mxu1 %v2810_v30  ;;  %v2849_v30 = vld [vmem:[#allocation8 + $0x48] sm:$0xff]   ;;  %2484 = vmatpush3.bf16.msra.mxu0 %v2848_v29 }
 0x118   :  { %2485 = vmatprep.subr.bf16.mxu0 %v2849_v30 }
 0x11a   :  { %1878 = vmatpush1.bf16.msra.mxu1 %v2808_v31 }
 0x11b   :  { %1879 = vmatprep.subr.bf16.mxu1 %v2813_v32 }
 0x11e   :  { %1880 = vmatpush1.bf16.msra.mxu1 %v2811_v35 }
 0x11f   :  { %1881 = vmatprep.subr.bf16.mxu1 %v2816_v40  ;;  %v2852_v40 = vld [vmem:[#allocation8 + $0x10] sm:$0xff]  }
 0x122   :  { %1882 = vmatpush1.bf16.msra.mxu1 %v2814_v44 }
 0x123   :  { %1883 = vmatprep.subr.bf16.mxu1 %v2819_v47 }
 0x126   :  { %1884 = vmatpush1.bf16.msra.mxu1 %v2817_v46 }
 0x127   :  { %1885 = vmatprep.subr.bf16.mxu1 %v2822_v53 }
 0x128   :  { %v3128_v17 = vpop.f32.mrb[0].mxu1 }
 0x129   :  { %v3130_v20 = vpop.f32.mrb[1].mxu1 }
 0x12a   :  { %v3132_v21 = vpop.f32.mrb[2].mxu1  ;;  %1886 = vmatpush1.bf16.msra.mxu1 %v2820_v55 }
 0x12b   :  { %v3134_v22 = vpop.f32.mrb[3].mxu1  ;;  %1908 = vmatprep.subr.bf16.mxu1 %v2825_v58 }
 0x133   :  { %v3136_v33 = vpop.f32.mrb[4].mxu1 }
 0x134   :  { %v3138_v34 = vpop.f32.mrb[5].mxu1 }
 0x135   :  { %v3140_v36 = vpop.f32.mrb[6].mxu1 }
 0x136   :  { %v3142_v37 = vpop.f32.mrb[7].mxu1 }
 0x148   :  { %v2412_v38 = vpop.f32.mrb[8].mxu1 }
 0x149   :  { %v2413_v39 = vpop.f32.mrb[9].mxu1 }
 0x14a   :  { %v2414_v41 = vadd.f32 %v2413_v39, %v2412_v38  ;;  %v2415_v42 = vpop.f32.mrb[10].mxu1  ;;  %v2850_v38 = vld [vmem:[#allocation8 + $0x8] sm:$0xff]   ;;  %v2851_v39 = vld [vmem:[#allocation8 + $0x50] sm:$0xff]  }
 0x14b   :  { %v2416_v43 = vpop.f32.mrb[11].mxu1  ;;  %2486 = vmatpush3.bf16.msra.mxu0 %v2850_v38 }
 0x14c   :  { %v2417_v18 = vadd.f32 %v2416_v43, %v2415_v42  ;;  %v1376_v61 = vadd.f32 %v2414_v41, %v334_v60  ;;  %2487 = vmatprep.subr.bf16.mxu0 %v2851_v39 }
 0x14e   :  { %v1379_v1 = vadd.f32 %v2417_v18, %v334_v60 }
 0x14f   :  { %2488 = vmatpush3.bf16.msra.mxu0 %v2852_v40 }
 0x150   :  { %v2418_v48 = vpop.f32.mrb[12].mxu1  ;;  %2489 = vmatprep.subr.bf16.mxu0 %v2853_v45  ;;  %v2826_v45 = vld [vmem:[#allocation7 + $0x110] ss:$8 sps:$4 sm:$0xff]  }
 0x151   :  { %v2419_v49 = vpop.f32.mrb[13].mxu1 }
 0x152   :  { %v2420_v51 = vadd.f32 %v2419_v49, %v2418_v48  ;;  %v2421_v52 = vpop.f32.mrb[14].mxu1  ;;  %v2854_v49 = vld [vmem:[#allocation8 + $0x18] sm:$0xff]  }
 0x153   :  { %v2422_v54 = vpop.f32.mrb[15].mxu1  ;;  %2490 = vmatpush3.bf16.msra.mxu0 %v2854_v49 }
 0x154   :  { %v2423_v56 = vadd.f32 %v2422_v54, %v2421_v52  ;;  %v1384_v8 = vadd.f32 %v2420_v51, %v334_v60  ;;  %v2855_v51 = vld [vmem:[#allocation8 + $0x60] sm:$0xff]  }
 0x155   :  { %2491 = vmatprep.subr.bf16.mxu0 %v2855_v51 }
 0x156   :  { %v1387_v11 = vadd.f32 %v2423_v56, %v334_v60 }
 0x157   :  { %2492 = vmatpush3.bf16.msra.mxu0 %v2856_v57  ;;  %v2843_v57 = vld [vmem:[#allocation7 + $0x164] ss:$8 sps:$4 sm:$0xff]  }
 0x16a   :  { %v2440_v62 = vpop.f32.mrb[16].mxu1 }
 0x16b   :  { %v2441_v63 = vpop.f32.mrb[17].mxu1 }
 0x16c   :  { %v2442_v2 = vadd.f32 %v2441_v63, %v2440_v62  ;;  %v2443_v3 = vpop.f32.mrb[18].mxu1  ;;  %v2857_v62 = vld [vmem:[#allocation8 + $0x68] sm:$0xff]  }
 0x16d   :  { %v2444_v4 = vpop.f32.mrb[19].mxu1  ;;  %2493 = vmatprep.subr.bf16.mxu0 %v2857_v62  ;;  %v2858_v62 = vld [vmem:[#allocation8 + $0x28] sm:$0xff]  }
 0x16e   :  { %v1425_v5 = vadd.f32 %v2442_v2, %v1376_v61  ;;  %v2445_v6 = vadd.f32 %v2444_v4, %v2443_v3  ;;  %2494 = vmatpush3.bf16.msra.mxu0 %v2858_v62 }
 0x170   :  { %v1428_v7 = vadd.f32 %v2445_v6, %v1379_v1  ;;  %v325_v6 = vsub.s32 0, %v3144_v50 }
 0x172   :  { %v2446_v9 = vpop.f32.mrb[20].mxu1 }
 0x173   :  { %v2447_v10 = vpop.f32.mrb[21].mxu1 }
 0x174   :  { %v2448_v12 = vadd.f32 %v2447_v10, %v2446_v9  ;;  %v2449_v13 = vpop.f32.mrb[22].mxu1 }
 0x175   :  { %v2450_v14 = vpop.f32.mrb[23].mxu1 }
 0x176   :  { %v1433_v15 = vadd.f32 %v2448_v12, %v1384_v8  ;;  %v2451_v16 = vadd.f32 %v2450_v14, %v2449_v13  ;;  %v326_v8 = vrot.slane %v3150_v59, %v325_v6 }
 0x178   :  { %v1436_v19 = vadd.f32 %v2451_v16, %v1387_v11 }
 0x18a   :  { %v2468_v23 = vpop.f32.mrb[24].mxu1 }
 0x18b   :  { %v2469_v24 = vpop.f32.mrb[25].mxu1 }
 0x18c   :  { %v2470_v25 = vadd.f32 %v2469_v24, %v2468_v23  ;;  %v2471_v26 = vpop.f32.mrb[26].mxu1 }
 0x18d   :  { %v2472_v27 = vpop.f32.mrb[27].mxu1 }
 0x18e   :  { %v2473_v31 = vadd.f32 %v2472_v27, %v2471_v26  ;;  %v1474_v32 = vadd.f32 %v2470_v25, %v1425_v5 }
 0x190   :  { %v1477_v35 = vadd.f32 %v2473_v31, %v1428_v7  ;;  %v329_v7 = vsub.s32 1, %v3144_v50 }
 0x192   :  { %v2474_v41 = vpop.f32.mrb[28].mxu1  ;;  %v330_v9 = vrot.slane %v3150_v59, %v329_v7 }
 0x193   :  { %v2475_v42 = vpop.f32.mrb[29].mxu1 }
 0x194   :  { %v2476_v43 = vadd.f32 %v2475_v42, %v2474_v41  ;;  %v2477_v18 = vpop.f32.mrb[30].mxu1  ;;  %v2823_v41 = vld [vmem:[#allocation7 + $0x100] ss:$8 sps:$4 sm:$0xff]  }
 0x195   :  { %v2478_v44 = vpop.f32.mrb[31].mxu1 }
 0x196   :  { %v2479_v47 = vadd.f32 %v2478_v44, %v2477_v18  ;;  %v1482_v46 = vadd.f32 %v2476_v43, %v1433_v15  ;;  %v2828_v18 = vld [vmem:[#allocation7 + $0x114] ss:$8 sps:$4 sm:$0xff]  }
 0x198   :  { %v1485_v48 = vadd.f32 %v2479_v47, %v1436_v19 }
 0x19a   :  { %v2515_v52 = vpop.f32.mrb[32].mxu1 }
 0x19b   :  { %v1531_v53 = vadd.f32 %v2515_v52, %v1482_v46  ;;  %v1522_v54 = vpop.f32.mrb[33].mxu1 }
 0x19c   :  { %v1523_v55 = vadd.f32 %v1522_v54, %v1474_v32  ;;  %v2516_v56 = vpop.f32.mrb[34].mxu1  ;;  %v2835_v54 = vld [vmem:[#allocation7 + $0x140] ss:$8 sps:$4 sm:$0xff]  }
 0x19d   :  { %v1545_v58 = vmax.f32 %v1531_v53, 0.0  ;;  %v1534_v60 = vadd.f32 %v2516_v56, %v1485_v48  ;;  %v1525_v61 = vpop.f32.mrb[35].mxu1  ;;  %v2831_v48 = vld [vmem:[#allocation7 + $0x124] ss:$8 sps:$4 sm:$0xff]   ;;  %v2829_v53 = vld [vmem:[#allocation7 + $0x120] ss:$8 sps:$4 sm:$0xff]  }
 0x19e   :  { %v1539_v63 = vmax.f32 %v1523_v55, 0.0  ;;  %v1526_v1 = vadd.f32 %v1525_v61, %v1477_v35  ;;  %v2840_v55 = vld [vmem:[#allocation7 + $0x154] ss:$8 sps:$4 sm:$0xff]   ;;  %v2838_v56 = vld [vmem:[#allocation7 + $0x150] ss:$8 sps:$4 sm:$0xff]  }
 0x19f   :  { %v1548_v2 = vmax.f32 %v1534_v60, 0.0  ;;  %v2846_v60 = vld [vmem:[#allocation7 + $0x174] ss:$8 sps:$4 sm:$0xff]   ;;  %v2844_v61 = vld [vmem:[#allocation7 + $0x170] ss:$8 sps:$4 sm:$0xff]  }
 0x1a0   :  { %v1542_v3 = vmax.f32 %v1526_v1, 0.0  ;;  %v2860_v1 = vld [vmem:[#allocation8 + $0x30] sm:$0xff]  }
 0x1a1   :  { %v3153_v4 = vpack.c.bf16 %v1548_v2, %v1545_v58  ;;  %v2841_v58 = vld [vmem:[#allocation7 + $0x160] ss:$8 sps:$4 sm:$0xff]   ;;  %v2861_v2 = vld [vmem:[#allocation8 + $0x78] sm:$0xff]  }
 0x1a2   :  { %v3155_v5 = vpack.c.bf16 %v1542_v3, %v1539_v63  ;;  %v2859_v63 = vld [vmem:[#allocation8 + $0x70] sm:$0xff]   ;;  %v2862_v3 = vld [vmem:[#allocation8 + $0x38] sm:$0xff]  }
 0x1a3   :  { %2495 = vmatprep.subr.bf16.mxu0 %v2859_v63 }
 0x1a4   :  { %2496 = vmatpush3.bf16.msra.mxu0 %v2860_v1 }
 0x1a5   :  { %2497 = vmatprep.subr.bf16.mxu0 %v2861_v2 }
 0x1a8   :  { %2498 = vmatpush3.bf16.msra.mxu0 %v2862_v3 }
 0x1e0   :  { %v1269_v10 = vpop.f32.mrb[0].mxu0 }
 0x1e1   :  { %v2517_v11 = vadd.f32 %v1269_v10, %v326_v8  ;;  %v1271_v12 = vpop.f32.mrb[1].mxu0 }
 0x1e2   :  { %v2519_v13 = vadd.f32 %v1271_v12, %v330_v9  ;;  %v1273_v14 = vpop.f32.mrb[2].mxu0 }
 0x1e3   :  { %v2518_v15 = vadd.f32 %v2517_v11, %v3128_v17  ;;  %v2521_v16 = vadd.f32 %v1273_v14, %v326_v8  ;;  %v1275_v19 = vpop.f32.mrb[3].mxu0 }
 0x1e4   :  { %v2520_v23 = vadd.f32 %v2519_v13, %v3130_v20  ;;  %v2523_v24 = vadd.f32 %v1275_v19, %v330_v9 }
 0x1e5   :  { %v2522_v25 = vadd.f32 %v2521_v16, %v3132_v21  ;;  %v1537_v27 = vmax.f32 %v2518_v15, 0.0 }
 0x1e6   :  { %v2524_v26 = vadd.f32 %v2523_v24, %v3134_v22  ;;  %v1538_v29 = vmax.f32 %v2520_v23, 0.0 }
 0x1e7   :  { %v1540_v28 = vmax.f32 %v2522_v25, 0.0 }
 0x1e8   :  { %v1541_v59 = vmax.f32 %v2524_v26, 0.0  ;;  %v1279_v30 = vpop.f32.mrb[4].mxu0 }
 0x1e9   :  { %v1549_v31 = vpack.c.bf16 %v1540_v28, %v1537_v27  ;;  %v2525_v32 = vadd.f32 %v1279_v30, %v326_v8  ;;  %v1281_v35 = vpop.f32.mrb[5].mxu0 }
 0x1ea   :  { %v2527_v38 = vadd.f32 %v1281_v35, %v330_v9  ;;  %v1283_v39 = vpop.f32.mrb[6].mxu0  ;;  %v1550_v17 = vpack.c.bf16 %v1541_v59, %v1538_v29 }
 0x1eb   :  { %v2526_v42 = vadd.f32 %v2525_v32, %v3136_v33  ;;  %v2529_v20 = vadd.f32 %v1283_v39, %v326_v8  ;;  %v1285_v43 = vpop.f32.mrb[7].mxu0  ;;  %v1603_v8 = vld [vmem:[%s3206_s4] sm:$0x3] }
 0x1ec   :  { %v2528_v21 = vadd.f32 %v2527_v38, %v3138_v34  ;;  %v2531_v22 = vadd.f32 %v1285_v43, %v330_v9  ;;  %1887 = vmatprep.mubr.bf16.mxu1 %v1550_v17  ;;  %v2834_v34 = vld [vmem:[#allocation7 + $0x134] ss:$8 sps:$4 sm:$0xff]  }
 0x1ed   :  { %v2530_v40 = vadd.f32 %v2529_v20, %v3140_v36  ;;  %1888 = vmatmul.mubr.bf16.vlgmr.msra.gmra.mrb[36].mxu1 %v1549_v31  ;;  %v1543_v47 = vmax.f32 %v2526_v42, 0.0  ;;  %v2832_v36 = vld [vmem:[#allocation7 + $0x130] ss:$8 sps:$4 sm:$0xff]   ;;  %v2379_v42 = vld [vmem:[%s3208_s6] ss:$0 sm:$0xff]  ;;  %s2951_s6 = scalar_lea.vmem %s2167_s11, 512 }
 0x1ee   :  { %v2532_v44 = vadd.f32 %v2531_v22, %v3142_v37  ;;  %1909 = vmatpush1.bf16.msra.mxu1 %v2823_v41  ;;  %v1544_v49 = vmax.f32 %v2528_v21, 0.0  ;;  %v2837_v37 = vld [vmem:[#allocation7 + $0x144] ss:$8 sps:$4 sm:$0xff]   ;;  %p2952_p4 = scmp.ne.s32.totalorder %s2167_s11, %s2951_s6  ;;  %p2957_p6 = scmp.lt.s32.totalorder %s2951_s6, %s2951_s6 }
 0x1ef   :  { %v1546_v46 = vmax.f32 %v2530_v40, 0.0  ;;  %1910 = vmatprep.subr.bf16.mxu1 %v2828_v18 }
 0x1f0   :  { %v1547_v33 = vmax.f32 %v2532_v44, 0.0  ;;  %p2958_p7 = por %p2957_p6, %p2956_p5 }
 0x1f1   :  { %v1552_v51 = vpack.c.bf16 %v1546_v46, %v1543_v47 }
 0x1f2   :  { %1911 = vmatpush1.bf16.msra.mxu1 %v2826_v45  ;;  %v1553_v52 = vpack.c.bf16 %v1547_v33, %v1544_v49  ;;  %p2959_p8 = pnand %p2958_p7, %p2952_p4 }
 0x1f3   :  { %1912 = vmatprep.subr.bf16.mxu1 %v2831_v48 }
 0x1f4   :  { %1897 = vmatprep.mubr.bf16.mxu1 %v1553_v52 }
 0x1f5   :  { %1898 = vmatmul.mubr.bf16.gmra.mrb[40].mxu1 %v1552_v51 }
 0x1f6   :  { %1913 = vmatpush1.bf16.msra.mxu1 %v2829_v53  ;;  %1940 = vmatprep.mubr.bf16.mxu1 %v2993_v0 }
 0x1f7   :  { %1914 = vmatprep.subr.bf16.mxu1 %v2834_v34 }
 0x1fa   :  { %1915 = vmatpush1.bf16.msra.mxu1 %v2832_v36 }
 0x1fb   :  { %1916 = vmatprep.subr.bf16.mxu1 %v2837_v37 }
 0x1fe   :  { %1917 = vmatpush1.bf16.msra.mxu1 %v2835_v54 }
 0x1ff   :  { %1918 = vmatprep.subr.bf16.mxu1 %v2840_v55 }
 0x202   :  { %1919 = vmatpush1.bf16.msra.mxu1 %v2838_v56 }
 0x203   :  { %1920 = vmatprep.subr.bf16.mxu1 %v2843_v57 }
 0x206   :  { %1921 = vmatpush1.bf16.msra.mxu1 %v2841_v58 }
 0x207   :  { %1922 = vmatprep.subr.bf16.mxu1 %v2846_v60 }
 0x20a   :  { %1923 = vmatpush1.bf16.msra.mxu1 %v2844_v61 }
 0x20d   :  { %1941 = vmatmul.mubr.bf16.vlgmr.msra.gmra.mrb[36].mxu1 %v3155_v5  ;;  %v1608_v5 = vrot.slane %v1603_v8, %v325_v6 }
 0x20e   :  { %1950 = vmatprep.mubr.bf16.mxu1 %v2993_v0  ;;  %v1612_v0 = vrot.slane %v1603_v8, %v329_v7 }
 0x215   :  { %1951 = vmatmul.mubr.bf16.gmra.mrb[40].mxu1 %v3153_v4 }
 0x2e0   :  { %v1942_v4 = vpop.f32.mrb[36].mxu1 }
 0x2e1   :  { %v2533_v9 = vadd.f32 %v1942_v4, %v1608_v5  ;;  %v1944_v10 = vpop.f32.mrb[37].mxu1 }
 0x2e2   :  { %v2534_v11 = vadd.f32 %v1944_v10, %v1612_v0  ;;  %v1946_v12 = vpop.f32.mrb[38].mxu1 }
 0x2e3   :  { %v2535_v13 = vadd.f32 %v1946_v12, %v1608_v5  ;;  %v1948_v14 = vpop.f32.mrb[39].mxu1  ;;  %v1961_v16 = vmax.f32 %v2533_v9, 0.0 }
 0x2e4   :  { %v2536_v15 = vadd.f32 %v1948_v14, %v1612_v0  ;;  %v1962_v23 = vmax.f32 %v2534_v11, 0.0 }
 0x2e5   :  { %v1963_v19 = vmax.f32 %v2535_v13, 0.0 }
 0x2e6   :  { %v1964_v24 = vmax.f32 %v2536_v15, 0.0 }
 0x2e7   :  { %v1969_v25 = vpack.c.bf16 %v1963_v19, %v1961_v16 }
 0x2e8   :  { %v1970_v26 = vpack.c.bf16 %v1964_v24, %v1962_v23  ;;  %v1952_v27 = vpop.f32.mrb[40].mxu1 }
 0x2e9   :  { %v2537_v28 = vadd.f32 %v1952_v27, %v1608_v5  ;;  %v1954_v6 = vpop.f32.mrb[41].mxu1 }
 0x2ea   :  { %v2538_v29 = vadd.f32 %v1954_v6, %v1612_v0  ;;  %v1956_v50 = vpop.f32.mrb[42].mxu1  ;;  %2140 = vmatprep.mubr.bf16.mxu0 %v1970_v26 }
 0x2eb   :  { %v2539_v7 = vadd.f32 %v1956_v50, %v1608_v5  ;;  %v1958_v59 = vpop.f32.mrb[43].mxu1  ;;  %2141 = vmatmul.mubr.bf16.vlgmr.msra.gmra.mrb[8].mxu0 %v1969_v25  ;;  %v1965_v31 = vmax.f32 %v2537_v28, 0.0 }
 0x2ec   :  { %v2540_v30 = vadd.f32 %v1958_v59, %v1612_v0  ;;  %v1966_v35 = vmax.f32 %v2538_v29, 0.0 }
 0x2ed   :  { %v1967_v32 = vmax.f32 %v2539_v7, 0.0 }
 0x2ee   :  { %v1968_v38 = vmax.f32 %v2540_v30, 0.0 }
 0x2ef   :  { %v1971_v39 = vpack.c.bf16 %v1967_v32, %v1965_v31 }
 0x2f0   :  { %v1972_v17 = vpack.c.bf16 %v1968_v38, %v1966_v35 }
 0x2f2   :  { %2148 = vmatprep.mubr.bf16.mxu0 %v1972_v17 }
 0x2f3   :  { %2149 = vmatmul.mubr.bf16.gmra.mrb[12].mxu0 %v1971_v39 }
 0x3be   :  { %v2499_v41 = vpop.f32.mrb[8].mxu0 }
 0x3bf   :  { %v2500_v20 = vpop.f32.mrb[9].mxu0 }
 0x3c0   :  { %v2501_v43 = vadd.f32 %v2500_v20, %v2499_v41  ;;  %v2502_v18 = vpop.f32.mrb[10].mxu0 }
 0x3c1   :  { %v2503_v21 = vpop.f32.mrb[11].mxu0 }
 0x3c2   :  { %v2143_v22 = vadd.f32 %v2501_v43, %v2379_v42  ;;  %v2504_v40 = vadd.f32 %v2503_v21, %v2502_v18 }
 0x3c4   :  { %2157 = vst [vmem:[#allocation10] sm:$0xff] %v2143_v22  ;;  %v2146_v44 = vadd.f32 %v2504_v40, %v2379_v42 }
 0x3c6   :  { %2158 = vst [vmem:[#allocation10 + $0x8] sm:$0xff] %v2146_v44  ;;  %v2505_v45 = vpop.f32.mrb[12].mxu0 }
 0x3c7   :  { %v2506_v47 = vpop.f32.mrb[13].mxu0 }
 0x3c8   :  { %v2507_v46 = vadd.f32 %v2506_v47, %v2505_v45  ;;  %v2508_v48 = vpop.f32.mrb[14].mxu0 }
 0x3c9   :  { %v2509_v49 = vpop.f32.mrb[15].mxu0 }
 0x3ca   :  { %v2151_v33 = vadd.f32 %v2507_v46, %v2379_v42  ;;  %v2510_v51 = vadd.f32 %v2509_v49, %v2508_v48 }
 0x3cc   :  { %2159 = vst [vmem:[#allocation10 + $0x10] sm:$0xff] %v2151_v33  ;;  %v2154_v52 = vadd.f32 %v2510_v51, %v2379_v42 }
 0x3ce   :  { %2160 = vst [vmem:[#allocation10 + $0x18] sm:$0xff] %v2154_v52 }
 0x3cf   :  { %2962 = shalt.err (!%p2959_p8)
}
 0x3d0   :  { %s2963_s14 = scalar_lea.hbm %s3209_s7, 512 }
 0x3d1   :  { %p2964_p9 = scmp.ne.s32.totalorder %s3209_s7, %s2963_s14  ;;  %p2967_p10 = scmp.lt.u32.totalorder %s2963_s14, %s3209_s7 }
 0x3d3   :  { %p2969_p11 = pnand %p2967_p10, %p2964_p9 }
 0x3d5   :  { %2972 = shalt.err (!%p2969_p11)
}
 0x3d6   :  { %2172 = dma.vmem_to_hbm [thread:$0]  %s2167_s11, 512, %s3209_s7, [#allocation4], %s2988_s0, %s2988_s0, %s2989_s15  }
 0x3d7   :  { %2979 = dma.done.wait [#allocation4], 512  }
 0x3d8   :  { %2980 = vsyncadd [#allocation4], 4294966784 }
 0x3d9   :  { %2176 = vsyncpa [#allocation3], 1 }
 0x3da   :  { %2177 = vsyncpa [#allocation6], 1 }
 0x3db   :  { %2178 = vsyncpa [#allocation9], 1 }
 0x3dc   :  { %2179 = vsyncpa [#allocation4], 1 }

</bundles_post_ra>
